<compile_context>
chip_gen: v7x
topology: tpu7x:2x2x1
jax: 0.10.0
libtpu: 0.0.40
codegen_flags: <defaults>
</compile_context>

<pallas_src>
import functools

import jax
import jax.numpy as jnp
from jax.experimental import pallas as pl
from jax.experimental.pallas import tpu as pltpu


def _lsce_kernel(x_ref, tgt_ref, out_ref, *, smoothing):
    confidence = 1.0 - smoothing
    c = x_ref.shape[-1]

    x = x_ref[...].astype(jnp.float32)          # (tile_m, C) f32 in vregs
    tgt = tgt_ref[...]                          # (tile_m, 1) int32

    # Row-wise logsumexp (numerically stable); logp is never materialized.
    m = jnp.max(x, axis=-1, keepdims=True)                       # (tm, 1)
    lse = m + jnp.log(jnp.sum(jnp.exp(x - m), axis=-1, keepdims=True))

    # nll    = lse - x[tgt]
    # smooth = lse - mean(x)
    # loss   = confidence*nll + smoothing*smooth
    #        = lse - sum_j w_j * x_j,  w_j = smoothing/C + confidence*[j==tgt]
    col = jax.lax.broadcasted_iota(jnp.int32, x.shape, 1)        # (tm, C)
    w = jnp.where(col == tgt, confidence + smoothing / c, smoothing / c)
    out_ref[...] = lse - jnp.sum(w * x, axis=-1, keepdims=True)  # (tm, 1)


def _pick_tile_m(n, c, itemsize, block_budget_bytes):
    """Largest multiple-of-8 divisor of n whose logits block fits the budget."""
    max_rows = max(8, block_budget_bytes // (c * itemsize))
    best, t = 8, 8
    limit = min(n, max_rows, 65536)   # cap the trace-time search loop
    while t <= limit:
        if n % t == 0:
            best = t
        t += 8
    return best


def label_smoothing_cross_entropy(x, target, smoothing=0.1,
                                  block_budget_bytes=4 << 20):
    """x: (N, C) float logits; target: (N,) int labels. Returns scalar mean loss."""
    assert smoothing < 1.0
    n, c = x.shape
    # TODO(synk): for vocab-scale C (32K-256K classes) add an inner "arbitrary"
    # class-tile axis with an online logsumexp instead of shrinking tile_m.

    # Pad the batch up to a multiple of 8 (sublane tiling); padded rows produce
    # finite garbage losses that are sliced off before the mean.
    n_pad = ((n + 7) // 8) * 8
    if n_pad != n:
        x = jnp.pad(x, ((0, n_pad - n), (0, 0)))
        target = jnp.pad(target, (0, n_pad - n))

    tile_m = _pick_tile_m(n_pad, c, x.dtype.itemsize, block_budget_bytes)
    tgt2d = target.astype(jnp.int32).reshape(n_pad, 1)
    kernel = functools.partial(_lsce_kernel, smoothing=float(smoothing))

    per_row = pl.pallas_call(
        kernel,
        out_shape=jax.ShapeDtypeStruct((n_pad, 1), jnp.float32),
        grid_spec=pltpu.PrefetchScalarGridSpec(
            num_scalar_prefetch=0,
            grid=(n_pad // tile_m,),
            in_specs=[
                # Logits: one large row tile per grid step (double-buffered).
                pl.BlockSpec((tile_m, c), lambda i: (i, 0)),
                # Targets: tiny per-tile block, DMA fully overlapped.
                pl.BlockSpec((tile_m, 1), lambda i: (i, 0)),
            ],
            out_specs=pl.BlockSpec((tile_m, 1), lambda i: (i, 0)),
        ),
        compiler_params=pltpu.CompilerParams(
            # Row tiles are fully independent -> megacore-shardable on v7x.
            dimension_semantics=("parallel",),
            # Above v5e's 16 MiB scoped default; safely below v7x's 64 MiB.
            vmem_limit_bytes=48 * 1024 * 1024,
        ),
    )(x, tgt2d)

    # Final mean over N scalars is trivial; doing it outside the kernel keeps
    # the grid free of any sequential accumulation.
    return jnp.mean(per_row[:n])


def _reference(x, target, smoothing=0.1):
    confidence = 1.0 - smoothing
    logp = jax.nn.log_softmax(x.astype(jnp.float32), axis=-1)
    nll = -jnp.take_along_axis(logp, target[:, None].astype(jnp.int32), axis=-1)[:, 0]
    smooth = -jnp.mean(logp, axis=-1)
    return jnp.mean(confidence * nll + smoothing * smooth)


if __name__ == "__main__":
    key = jax.random.PRNGKey(0)
    kx, kt = jax.random.split(key)

    # Test 1: multi-step grid (small block budget -> tile_m=32, 4 grid steps);
    # C multiple of 128.
    N, C = 128, 256
    x = jax.random.normal(kx, (N, C), dtype=jnp.float32)
    target = jax.random.randint(kt, (N,), 0, C, dtype=jnp.int32)
    loss = label_smoothing_cross_entropy(x, target, smoothing=0.1,
                                         block_budget_bytes=32 * C * 4)
    loss = jax.block_until_ready(loss)
    ref = _reference(x, target, smoothing=0.1)
    assert jnp.allclose(loss, ref, atol=1e-5, rtol=1e-5), (loss, ref)

    # Test 2: N NOT a multiple of 8 (padding path) and C NOT a multiple of 128
    # (full-extent class block, compiler masks lane padding in reductions).
    kx2, kt2 = jax.random.split(kt)
    N2, C2 = 60, 200
    x2 = jax.random.normal(kx2, (N2, C2), dtype=jnp.float32)
    target2 = jax.random.randint(kt2, (N2,), 0, C2, dtype=jnp.int32)
    loss2 = label_smoothing_cross_entropy(x2, target2, smoothing=0.1)
    loss2 = jax.block_until_ready(loss2)
    ref2 = _reference(x2, target2, smoothing=0.1)
    assert jnp.allclose(loss2, ref2, atol=1e-5, rtol=1e-5), (loss2, ref2)

    # Test 3: bf16 logits (kernel reads bf16, upcasts to f32 in vregs).
    kx3, kt3 = jax.random.split(kt2)
    N3, C3 = 64, 384
    x3 = jax.random.normal(kx3, (N3, C3), dtype=jnp.bfloat16)
    target3 = jax.random.randint(kt3, (N3,), 0, C3, dtype=jnp.int32)
    loss3 = label_smoothing_cross_entropy(x3, target3, smoothing=0.1)
    loss3 = jax.block_until_ready(loss3)
    ref3 = _reference(x3, target3, smoothing=0.1)
    assert jnp.allclose(loss3, ref3, atol=1e-4, rtol=1e-4), (loss3, ref3)

    print("KERNEL_OK")
</pallas_src>

<mosaic_0001>
module attributes {stable_mosaic.version = 11 : i64} {
  func.func @_lsce_kernel(%arg0: i32, %arg1: memref<32x256xf32, #tpu.memory_space<vmem>>, %arg2: memref<32x1xi32, #tpu.memory_space<vmem>>, %arg3: memref<32x1xf32, #tpu.memory_space<vmem>>) attributes {dimension_semantics = [#tpu.dimension_semantics<parallel>], iteration_bounds = array<i64: 4>, scalar_prefetch = 0 : i64, scratch_operands = 0 : i64, tpu.core_type = #tpu.core_type<tc>, window_params = [{transform_indices = @transform_0, window_bounds = array<i64: 32, 256>}, {transform_indices = @transform_1, window_bounds = array<i64: 32, 1>}, {transform_indices = @transform_2, window_bounds = array<i64: 32, 1>}]} {
    %c0 = arith.constant 0 : index
    %c0_0 = arith.constant 0 : index
    %0 = vector.load %arg1[%c0, %c0_0] : memref<32x256xf32, #tpu.memory_space<vmem>>, vector<32x256xf32>
    %c0_1 = arith.constant 0 : index
    %c0_2 = arith.constant 0 : index
    %1 = vector.load %arg2[%c0_1, %c0_2] : memref<32x1xi32, #tpu.memory_space<vmem>>, vector<32x1xi32>
    %cst = arith.constant dense<0xFF800000> : vector<32xf32>
    %2 = vector.multi_reduction <maximumf>, %0, %cst [1] : vector<32x256xf32> to vector<32xf32>
    %3 = vector.shape_cast %2 : vector<32xf32> to vector<32x1xf32>
    %4 = vector.broadcast %3 : vector<32x1xf32> to vector<32x256xf32>
    %5 = arith.subf %0, %4 : vector<32x256xf32>
    %6 = math.exp %5 : vector<32x256xf32>
    %cst_3 = arith.constant dense<0.000000e+00> : vector<32xf32>
    %7 = vector.multi_reduction <add>, %6, %cst_3 [1] : vector<32x256xf32> to vector<32xf32>
    %8 = vector.shape_cast %7 : vector<32xf32> to vector<32x1xf32>
    %9 = math.log %8 : vector<32x1xf32>
    %10 = arith.addf %3, %9 : vector<32x1xf32>
    %11 = tpu.iota {dimensions = array<i32: 1>} : vector<32x256xi32>
    %12 = vector.broadcast %1 : vector<32x1xi32> to vector<32x256xi32>
    %13 = arith.cmpi eq, %11, %12 : vector<32x256xi32>
    %cst_4 = arith.constant 0.900390625 : f32
    %cst_5 = arith.constant 3.906250e-04 : f32
    %14 = vector.broadcast %cst_4 : f32 to vector<32x256xf32>
    %15 = vector.broadcast %cst_5 : f32 to vector<32x256xf32>
    %16 = arith.select %13, %14, %15 : vector<32x256xi1>, vector<32x256xf32>
    %17 = arith.mulf %16, %0 : vector<32x256xf32>
    %cst_6 = arith.constant dense<0.000000e+00> : vector<32xf32>
    %18 = vector.multi_reduction <add>, %17, %cst_6 [1] : vector<32x256xf32> to vector<32xf32>
    %19 = vector.shape_cast %18 : vector<32xf32> to vector<32x1xf32>
    %20 = arith.subf %10, %19 : vector<32x1xf32>
    %c0_7 = arith.constant 0 : index
    %c0_8 = arith.constant 0 : index
    %21 = vector.load %arg3[%c0_7, %c0_8] : memref<32x1xf32, #tpu.memory_space<vmem>>, vector<32x1xf32>
    tpu.vector_store %arg3[%c0_7, %c0_8], %20 {strides = array<i32>} : memref<32x1xf32, #tpu.memory_space<vmem>>, vector<32x1xf32>,
    return
  }
  func.func @transform_0(%arg0: i32) -> (i32, i32) {
    %c0_i32 = arith.constant 0 : i32
    %c0_i32_0 = arith.constant 0 : i32
    return %arg0, %c0_i32 : i32, i32
  }
  func.func @transform_1(%arg0: i32) -> (i32, i32) {
    %c0_i32 = arith.constant 0 : i32
    %c0_i32_0 = arith.constant 0 : i32
    return %arg0, %c0_i32 : i32, i32
  }
  func.func @transform_2(%arg0: i32) -> (i32, i32) {
    %c0_i32 = arith.constant 0 : i32
    %c0_i32_0 = arith.constant 0 : i32
    return %arg0, %c0_i32 : i32, i32
  }
}

</mosaic_0001>

<bundles_post_ra>
// kernel: tpu_custom_call.1
= control target key start
LH: loop header
LB: loop body
LE: loop exit
PB: predicated region body
PF: predicated region fallthrough
CT: control target
= control target key end

     0   :  { %7 = vsyncpa [#allocation3], 0  ;;  %s754_s0 = inlined_call_operand.hbm [shape: f32[128,256], index: 0, kind: input, shape index: {}]   ;;  %s755_s1 = inlined_call_operand.vmem [shape: s32[128,1], index: 1, kind: input, shape index: {}]   ;;  %s756_s2 = inlined_call_operand.vmem [shape: f32[128,1], index: 2, kind: output, shape index: {}]  }
   0x1   :  { %9 = vsyncpa [#allocation3 + $0x1], 0  ;;  %s573_s9 = smov 0   ;;  %s575_s10 = smov 0  }
   0x2   :  { %s577_s11 = smov 0   ;;  %s579_s12 = smov 0  }
   0x3 LB: > { %s400_s13 = sadd.s32 4294967295, %s551_s12   ;;  %s593_s14 = sadd.s32 1, %s551_s12   ;;  %s551_s12 = sphi %s579_s12, %s763_s12   ;;  %s547_s11 = sphi %s577_s11, %s762_s11   ;;  %s543_s10 = sphi %s575_s10, %s761_s10   ;;  %s539_s9 = sphi %s573_s9, %s760_s9  }
   0x4   : > { %s19_s15 = ssub.s32 %s551_s12, %s593_s14  ;;  %s22_s16 = sadd.s32 1, %s547_s11 }
   0x5   : > { %p20_p0 = scmp.eq.s32.totalorder %s19_s15, 0  ;;  %p29_p1 = scmp.ne.s32.totalorder %s547_s11, %s543_s10 }
   0x6   : > { %p30_p2 = scmp.eq.s32.totalorder %s551_s12, 0  ;;  %p35_p3 = scmp.ne.s32.totalorder %s543_s10, %s539_s9 }
   0x7   : > { %s603_s17 = scalar_select %p20_p0, %s547_s11, %s22_s16  }
   0x8   : > { %p31_p4 = por %p30_p2, %p29_p1  ;;  %p36_p5 = scmp.eq.s32.totalorder %s400_s13, 0 }
   0x9   : > { %p424_p6 = scmp.lt.s32.totalorder %s551_s12, 4  ;;  %s111_s19 = sand.u32 1, %s547_s11  }
   0xa   : > { %p608_p7 = por %p36_p5, %p35_p3  ;;  %s404_s20 = sshll.u32 %s111_s19, 6 }
   0xb   : > { %s417_s21 = sshll.u32 %s551_s12, 10  ;;  %s115_s25 = scalar_lea.vmem [#allocation2], %s404_s20 }
   0xc   : > { %s617_s24 = scalar_lea.hbm %s754_s0, %s417_s21  ;;  %s123_s26 = sshll.u32 %s115_s25, 4  ;;  %s619_s26 = int_to_ptr.vmem [resolvable:$true] %s123_s26 }
   0xd   : > { %p621_p8 = pnand %p424_p6, %p31_p4  ;;  %s626_s28 = scalar_lea.sflag [#allocation3], %s111_s19 }
   0xe   : > { %s487_s29 = scalar_lea.hbm %s617_s24, 1024  ;;  %s492_s4 = scalar_lea.hbm %s754_s0, 4096 }
   0xf   : > { %p488_p10 = scmp.ne.s32.totalorder %s617_s24, %s487_s29  ;;  %p489_p11 = pneg %p621_p8 }
  0x10   : > { %p493_p0 = scmp.lt.u32.totalorder %s617_s24, %s754_s0  ;;  %p494_p1 = scmp.lt.u32.totalorder %s492_s4, %s487_s29 }
  0x11   : > { %p490_p12 = pnand %p489_p11, %p488_p10  ;;  %p496_p3 = scmp.lt.u32.totalorder %s487_s29, %s617_s24 }
  0x12   : > { %p495_p2 = por %p494_p1, %p493_p0 }
  0x13   : > { %p491_p13 = pneg %p490_p12 }
  0x14   : > { %p497_p4 = por %p496_p3, %p495_p2 }
  0x16   : > { %p498_p5 = pnand %p497_p4, %p491_p13 }
  0x18   : > { %501 = shalt.err (!%p498_p5)
}
  0x19   : > { %s502_s7 = scalar_lea.vmem %s619_s26, 1024  ;;  %s553_s8 = smov [#allocation2]  }
  0x1a   : > { %p503_p6 = scmp.ne.s32.totalorder %s619_s26, %s502_s7  ;;  %s507_s9 = sshll.u32 %s553_s8, 4  ;;  %s508_s9 = int_to_ptr.vmem [resolvable:$false] %s507_s9 }
  0x1b   : > { %s509_s15 = scalar_lea.vmem %s508_s9, 2048  ;;  %p510_p9 = scmp.lt.s32.totalorder %s619_s26, %s508_s9 }
  0x1c   : > { %p505_p10 = pnand %p503_p6, %p489_p11  ;;  %p511_p0 = scmp.lt.s32.totalorder %s509_s15, %s502_s7 }
  0x1e   : > { %p506_p12 = pneg %p505_p10  ;;  %p512_p1 = por %p511_p0, %p510_p9 }
  0x20   : > { %p513_p2 = pnand %p512_p1, %p506_p12 }
  0x22   : > { %516 = shalt.err (!%p513_p2)
}
  0x23   : > { %s554_s16 = smov 256   ;;  %s555_s19 = smov 16  }
  0x24   : > { %423 = dma.hbm_to_vmem [thread:$0]  (!%p621_p8), %s617_s24, 1024, %s619_s26, %s626_s28, %s554_s16, %s554_s16, %s555_s19  }
  0x25   : > { %p140_p11 = scmp.lt.s32.totalorder %s551_s12, 5  ;;  %p759_p13 = scmp.ge.s32.totalorder %s551_s12, 1 }
  0x27   : > { %p141_p3 = pnand %p759_p13, %p140_p11 }
  0x28   : > { %s146_s20 = sand.u32 (!%p141_p3), 1, %s543_s10  }
  0x29   : > { %144 = sbr.rel (%p141_p3) target bundleno = 380 (0x17c), region = 28  ;;  %s409_s21 = sshll.u32 (!%p141_p3), %s146_s20, 6 }
  0x2a   : > { %s147_s22 = scalar_lea.sflag (!%p141_p3), [#allocation3], %s146_s20  ;;  %s150_s23 = scalar_lea.vmem (!%p141_p3), [#allocation2], %s409_s21 }
  0x30   : > { %534 = dma.done.wait (%p608_p7), %s147_s22, 1024  }
  0x31   : > { %536 = vsyncadd (%p608_p7), %s147_s22, 4294966272  ;;  %v556_v0 = vmov 0   ;;  %v662_v1 = vld [vmem:[%s150_s23] sm:$0xff]  ;;  %v664_v2 = vld [vmem:[%s150_s23 + $0x8] sm:$0xff]  ;;  %s410_s18 = sshll.u32 %s400_s13, 2  ;;  %v261_v28 = vlaneseq  ;;  %vm316_vm8 = vcmask 7168  }
  0x32   : > { %462 = vset.pattern.permute.xlu1 %v556_v0  ;;  %461 = vset.pattern.permute.xlu0 %v556_v0  ;;  %v666_v3 = vld [vmem:[%s150_s23 + $0x20] sm:$0xff]  ;;  %v201_v4 = vmax.f32 %v662_v1, %v664_v2  ;;  %v670_v5 = vld [vmem:[%s150_s23 + $0x28] sm:$0xff]  ;;  %v672_v6 = vld [vmem:[%s150_s23 + $0x10] sm:$0xff]  ;;  %p178_p7 = scmp.lt.s32.totalorder %s410_s18, 15  ;;  %v557_v45 = vmov 0.000390625  }
  0x33   : > { %v674_v7 = vld [vmem:[%s150_s23 + $0x18] sm:$0xff]  ;;  %v207_v8 = vmax.f32 %v666_v3, %v670_v5  ;;  %v678_v9 = vld [vmem:[%s150_s23 + $0x30] sm:$0xff]  ;;  %v262_v38 = vand.u32 127, %v261_v28 }
  0x34   : > { %v680_v10 = vld [vmem:[%s150_s23 + $0x38] sm:$0xff]  ;;  %202 = vmax.xlane.f32.xlu0 %v201_v4  ;;  %v204_v11 = vmax.f32 %v672_v6, %v674_v7  ;;  %s765_s18 = smov (!%p178_p7, %s410_s18), 15 }
  0x35   : > { %208 = vmax.xlane.f32.xlu1 %v207_v8  ;;  %v210_v12 = vmax.f32 %v678_v9, %v680_v10  ;;  %s411_s24 = sshll.u32 %s765_s18, 3  ;;  %v263_v40 = vadd.s32 128, %v262_v38 }
  0x36   : > { %s181_s27 = scalar_lea.vmem %s755_s1, %s411_s24  ;;  %s187_s28 = scalar_lea.vmem %s756_s2, %s411_s24 }
  0x37   : > { %v198_v13 = vld [vmem:[%s181_s27 + $0x8] sm:$0xff]  ;;  %v199_v14 = vld [vmem:[%s181_s27 + $0x10] sm:$0xff]  ;;  %v197_v15 = vld [vmem:[%s181_s27] sm:$0xff] }
  0x38   : > { %205 = vmax.xlane.f32.xlu0 %v204_v11  ;;  %v200_v16 = vld [vmem:[%s181_s27 + $0x18] sm:$0xff] }
  0x39   : > { %211 = vmax.xlane.f32.xlu1 %v210_v12 }
  0x4a   : > { %268 = vperm.xlu1 %462, %v198_v13  }
  0x4e   : > { %271 = vperm.xlu1 %462, %v199_v14   ;;  %265 = vperm.xlu0 %461, %v197_v15  }
  0x52   : > { %274 = vperm.xlu1 %462, %v200_v16  }
  0xc1   : > { %v696_v17 = vpop.xlane.xlu0 %202 }
  0xc2   : > { %v213_v18 = vsub.f32 %v662_v1, %v696_v17  ;;  %v214_v19 = vsub.f32 %v664_v2, %v696_v17  ;;  %v702_v20 = vpop.xlane.xlu1 %208 }
  0xc3   : > { %v217_v21 = vsub.f32 %v666_v3, %v702_v20  ;;  %v218_v22 = vsub.f32 %v670_v5, %v702_v20 }
  0xc4   : > { %v221_v23 = vmul.f32 1.442695, %v213_v18  ;;  %v223_v24 = vmul.f32 1.442695, %v214_v19 }
  0xc5   : > { %v229_v25 = vmul.f32 1.442695, %v217_v21  ;;  %v231_v26 = vmul.f32 1.442695, %v218_v22  ;;  %v708_v27 = vpop.xlane.xlu0 %205 }
  0xc6   : > { %463 = vpow2.f32 %v221_v23  ;;  %v215_v29 = vsub.f32 %v672_v6, %v708_v27  ;;  %v216_v30 = vsub.f32 %v674_v7, %v708_v27  ;;  %v714_v31 = vpop.xlane.xlu1 %211 }
  0xc7   : > { %465 = vpow2.f32 %v223_v24  ;;  %v219_v32 = vsub.f32 %v678_v9, %v714_v31  ;;  %v220_v33 = vsub.f32 %v680_v10, %v714_v31 }
  0xc8   : > { %467 = vpow2.f32 %v229_v25  ;;  %v225_v34 = vmul.f32 1.442695, %v215_v29  ;;  %v227_v35 = vmul.f32 1.442695, %v216_v30 }
  0xc9   : > { %469 = vpow2.f32 %v231_v26  ;;  %v233_v36 = vmul.f32 1.442695, %v219_v32  ;;  %v235_v37 = vmul.f32 1.442695, %v220_v33 }
  0xca   : > { %471 = vpow2.f32 %v225_v34  ;;  %v269_v39 = vpop.permute.xlu1 %268 }
  0xcb   : > { %473 = vpow2.f32 %v227_v35  ;;  %vm278_vm4 = vcmp.eq.s32.totalorder %v262_v38, %v269_v39  ;;  %vm279_vm5 = vcmp.eq.s32.totalorder %v263_v40, %v269_v39 }
  0xcc   : > { %475 = vpow2.f32 %v233_v36  ;;  %v286_v61 = vsel %vm278_vm4, 0.9003906, %v557_v45  ;;  %v287_v63 = vsel %vm279_vm5, 0.9003906, %v557_v45 }
  0xcd   : > { %477 = vpow2.f32 %v235_v37  ;;  %v266_v42 = vpop.permute.xlu0 %265 }
  0xce   : > { %v272_v41 = vpop.permute.xlu1 %271  ;;  %vm276_vm2 = vcmp.eq.s32.totalorder %v262_v38, %v266_v42  ;;  %vm277_vm3 = vcmp.eq.s32.totalorder %v263_v40, %v266_v42 }
  0xcf   : > { %vm280_vm0 = vcmp.eq.s32.totalorder %v262_v38, %v272_v41  ;;  %vm281_vm1 = vcmp.eq.s32.totalorder %v263_v40, %v272_v41  ;;  %v284_v53 = vsel %vm276_vm2, 0.9003906, %v557_v45  ;;  %v285_v57 = vsel %vm277_vm3, 0.9003906, %v557_v45 }
  0xd0   : > { %v464_v43 = vpop.eup %463  ;;  %v288_v46 = vsel %vm280_vm0, 0.9003906, %v557_v45  ;;  %v289_v47 = vsel %vm281_vm1, 0.9003906, %v557_v45  ;;  %v292_v62 = vmul.f32 %v284_v53, %v662_v1  ;;  %v293_v4 = vmul.f32 %v285_v57, %v664_v2 }
  0xd1   : > { %v466_v44 = vpop.eup %465  ;;  %v296_v54 = vmul.f32 %v288_v46, %v666_v3  ;;  %v297_v55 = vmul.f32 %v289_v47, %v670_v5  ;;  %v294_v3 = vmul.f32 %v286_v61, %v672_v6  ;;  %v295_v5 = vmul.f32 %v287_v63, %v674_v7 }
  0xd2   : > { %v468_v48 = vpop.eup %467  ;;  %v237_v49 = vadd.f32 %v466_v44, %v464_v43  ;;  %v275_v11 = vpop.permute.xlu1 %274  ;;  %v300_v12 = vadd.f32 %v293_v4, %v292_v62 }
  0xd3   : > { %v470_v50 = vpop.eup %469  ;;  %v306_v8 = vadd.f32 %v297_v55, %v296_v54  ;;  %vm282_vm6 = vcmp.eq.s32.totalorder %v262_v38, %v275_v11  ;;  %vm283_vm7 = vcmp.eq.s32.totalorder %v263_v40, %v275_v11  ;;  %v303_v1 = vadd.f32 %v295_v5, %v294_v3 }
  0xd4   : > { %v472_v51 = vpop.eup %471  ;;  %238 = vadd.xlane.f32.xlu1 %v237_v49  ;;  %v243_v52 = vadd.f32 %v470_v50, %v468_v48  ;;  %v290_v13 = vsel %vm282_vm6, 0.9003906, %v557_v45  ;;  %v291_v14 = vsel %vm283_vm7, 0.9003906, %v557_v45 }
  0xd5   : > { %v474_v56 = vpop.eup %473  ;;  %v298_v15 = vmul.f32 %v290_v13, %v678_v9  ;;  %v299_v16 = vmul.f32 %v291_v14, %v680_v10 }
  0xd6   : > { %v476_v58 = vpop.eup %475  ;;  %v240_v59 = vadd.f32 %v474_v56, %v472_v51 }
  0xd7   : > { %v478_v60 = vpop.eup %477  ;;  %v309_v2 = vadd.f32 %v299_v16, %v298_v15 }
  0xd8   : > { %244 = vadd.xlane.f32.xlu1 %v243_v52  ;;  %241 = vadd.xlane.f32.xlu0 %v240_v59  ;;  %v246_v0 = vadd.f32 %v478_v60, %v476_v58 }
  0xdc   : > { %247 = vadd.xlane.f32.xlu1 %v246_v0  ;;  %307 = vadd.xlane.f32.xlu0 %v306_v8 }
  0xe0   : > { %301 = vadd.xlane.f32.xlu1 %v300_v12 }
  0xe4   : > { %304 = vadd.xlane.f32.xlu1 %v303_v1 }
  0xe8   : > { %310 = vadd.xlane.f32.xlu1 %v309_v2 }
 0x161   : > { %v239_v6 = vpop.xlane.xlu1 %238 }
 0x162   : > { %479 = vlog2.f32 %v239_v6 }
 0x165   : > { %v245_v7 = vpop.xlane.xlu1 %244  ;;  %v242_v18 = vpop.xlane.xlu0 %241 }
 0x166   : > { %481 = vlog2.f32 %v245_v7 }
 0x167   : > { %483 = vlog2.f32 %v242_v18 }
 0x169   : > { %v248_v19 = vpop.xlane.xlu1 %247  ;;  %v308_v33 = vpop.xlane.xlu0 %307 }
 0x16a   : > { %485 = vlog2.f32 %v248_v19 }
 0x16c   : > { %v480_v21 = vpop.eup %479 }
 0x16d   : > { %v250_v22 = vmul.f32 0.6931472, %v480_v21  ;;  %v302_v23 = vpop.xlane.xlu1 %301 }
 0x16f   : > { %v257_v24 = vadd.f32 %v250_v22, %v696_v17 }
 0x170   : > { %v482_v9 = vpop.eup %481 }
 0x171   : > { %v484_v10 = vpop.eup %483  ;;  %v254_v25 = vmul.f32 0.6931472, %v482_v9  ;;  %v312_v26 = vsub.f32 %v257_v24, %v302_v23  ;;  %v305_v29 = vpop.xlane.xlu1 %304 }
 0x172   : > { %v252_v28 = vmul.f32 0.6931472, %v484_v10 }
 0x173   : > { %317 = vst.msk [vmem:[%s187_s28] sm:$0xff] %vm316_vm8, %v312_v26  ;;  %v259_v30 = vadd.f32 %v254_v25, %v702_v20 }
 0x174   : > { %v486_v32 = vpop.eup %485  ;;  %v258_v17 = vadd.f32 %v252_v28, %v708_v27 }
 0x175   : > { %v256_v34 = vmul.f32 0.6931472, %v486_v32  ;;  %v314_v35 = vsub.f32 %v259_v30, %v308_v33  ;;  %v311_v38 = vpop.xlane.xlu1 %310 }
 0x176   : > { %v313_v36 = vsub.f32 %v258_v17, %v305_v29 }
 0x177   : > { %319 = vst.msk [vmem:[%s187_s28 + $0x10] sm:$0xff] %vm316_vm8, %v314_v35  ;;  %v260_v37 = vadd.f32 %v256_v34, %v714_v31 }
 0x178   : > { %318 = vst.msk [vmem:[%s187_s28 + $0x8] sm:$0xff] %vm316_vm8, %v313_v36 }
 0x179   : > { %v315_v39 = vsub.f32 %v260_v37, %v311_v38 }
 0x17b   : > { %320 = vst.msk [vmem:[%s187_s28 + $0x18] sm:$0xff] %vm316_vm8, %v315_v39 }
 0x17c PF: > { %p12_p8 = scmp.ge.s32.totalorder %s593_s14, 6   ;;  %s760_s9 = smov %s543_s10 }
 0x17d   : > { %s761_s10 = smov %s547_s11  ;;  %s762_s11 = smov %s603_s17 }
 0x17e   : > { %s763_s12 = smov %s593_s14  ;;  %14 = sbr.rel (!%p12_p8) target bundleno = 3 (0x3), region = 71 }
 0x185   :  { %343 = vsyncpa [#allocation3], 1 }
 0x186   :  { %345 = vsyncpa [#allocation3 + $0x1], 1 }

</bundles_post_ra>
